<compile_context>
chip_gen: v7x
topology: tpu7x:2x2x1
jax: 0.10.0
libtpu: 0.0.40
codegen_flags: <defaults>
</compile_context>

<pallas_src>
import functools

import jax
import jax.numpy as jnp
from jax.experimental import pallas as pl
from jax.experimental.pallas import tpu as pltpu


def _round_up(a, b):
    return (a + b - 1) // b * b


# ----------------------------------------------------------------------------- hardware query
_HW_CACHE = {}


def _tpu_budget_and_cores():
    """Usable VMEM budget (bytes) and TensorCores-per-chip (best effort)."""
    if "v" in _HW_CACHE:
        return _HW_CACHE["v"]
    vmem = 64 * 1024 * 1024          # safe default (v7x-sized)
    n_tc = 1
    try:
        info = pltpu.get_tpu_info()
        vmem = int(getattr(info, "vmem_capacity_bytes", vmem) or vmem)
    except Exception:
        pass
    try:
        kind = jax.devices()[0].device_kind.lower()
        if "v7" in kind or "7x" in kind:
            n_tc = 2                 # v7x: 2 TensorCores per chip
    except Exception:
        pass
    # Headroom for Mosaic internal scratch: 128 MiB chips -> ~104 MiB usable,
    # 64 MiB chips (v7x) -> ~56 MiB usable.
    headroom = 24 * 1024 * 1024 if vmem >= 128 * 1024 * 1024 else 8 * 1024 * 1024
    budget = max(16 * 1024 * 1024, vmem - headroom)
    _HW_CACHE["v"] = (budget, n_tc)
    return budget, n_tc


# ----------------------------------------------------------------------------- kernel
def _ffn_kernel(x_ref, w13_ref, w2_ref, o_ref, *acc):
    # x_ref  : [tm, dim]    input dtype (cast to bf16 in-kernel)
    # w13_ref: [dim, 2*th]  bf16   (w1 tile | w3 tile, lane-aligned halves)
    # w2_ref : [th, dim]    bf16
    # o_ref  : [tm, dim]    output dtype (f32 -> used directly as accumulator)
    # acc    : optional f32 scratch accumulator (only when o_ref is not f32)
    j = pl.program_id(1)
    acc_ref = acc[0] if acc else o_ref

    x = x_ref[...].astype(jnp.bfloat16)
    h = jnp.dot(x, w13_ref[...], preferred_element_type=jnp.float32)  # [tm, 2*th]
    th = h.shape[1] // 2
    h1 = h[:, :th]
    h3 = h[:, th:]

    # SwiGLU gate in f32 (sigmoid runs on the EUP slot, hidden under MXU work).
    gated = (h1 * jax.nn.sigmoid(h1)) * h3
    # TODO(synk): training-mode nn.Dropout(p>0) would mask `gated` via
    #             pltpu.prng_random_bits; eval-mode dropout is the identity.

    contrib = jnp.dot(gated.astype(jnp.bfloat16), w2_ref[...],
                      preferred_element_type=jnp.float32)

    @pl.when(j == 0)
    def _():
        acc_ref[...] = contrib            # direct assign: no zero-init pass

    @pl.when(j > 0)
    def _():
        acc_ref[...] += contrib

    if acc:                               # only when out dtype != f32
        @pl.when(j == pl.num_programs(1) - 1)
        def _():
            o_ref[...] = acc_ref[...].astype(o_ref.dtype)


# ----------------------------------------------------------------------------- parameter prep
def _choose_th(hidden, th_req, dim, budget):
    """Largest 128-multiple divisor of `hidden` <= th_req that also keeps the
    double-buffered weight tiles (~12*dim*th bytes) within half the VMEM budget."""
    cap = max(128, (budget // (24 * dim)) // 128 * 128)
    th_max = min(th_req, hidden, cap)
    if hidden % 128 == 0:
        t = max(128, (th_max // 128) * 128)
        while t >= 128:
            if hidden % t == 0:
                return t
            t -= 128
    return hidden          # tiny / non-128-aligned hidden: single tile


def prepare_ffn_params(w1, w2, w3, *, th=512, dtype=jnp.bfloat16):
    """One-time parameter prep (call at init time, not per forward).

    w1, w3: [hidden, dim], w2: [dim, hidden]  (PyTorch nn.Linear layout).
    Returns (w13, w2t, th) with
      w13: [n_h, dim, 2*th]  tile-major (each hidden tile contiguous in HBM),
      w2t: [n_h, th,  dim]   tile-major,
    both cast to `dtype` (bf16 -> MXU-native, half the weight HBM traffic).
    """
    # TODO(synk): optional fp8 weight storage (+per-tile scales) for v7x.
    hidden, dim = w1.shape
    budget, _ = _tpu_budget_and_cores()
    th = _choose_th(hidden, th, dim, budget)
    n_h = hidden // th

    w1_t = jnp.asarray(w1).T.astype(dtype)                       # [dim, hidden]
    w3_t = jnp.asarray(w3).T.astype(dtype)
    w13 = jnp.concatenate(
        [w1_t.reshape(dim, n_h, th), w3_t.reshape(dim, n_h, th)],
        axis=-1)                                                 # [dim, n_h, 2*th]
    w13 = jnp.transpose(w13, (1, 0, 2))                          # [n_h, dim, 2*th]
    w2t = jnp.asarray(w2).T.astype(dtype).reshape(n_h, th, dim)  # [n_h, th, dim]
    return w13, w2t, th


# ----------------------------------------------------------------------------- tiling choice
def _choose_tm(M, dim, th, x_bytes, out_bytes, need_acc, budget, tm_max):
    m_al = _round_up(M, 16)                      # >=16-row alignment (bf16 sublane pack)

    def usage(t):
        per_buf = (2 * t * dim * x_bytes         # x tiles (double buffered)
                   + 2 * dim * 2 * th * 2        # w13 tiles (bf16)
                   + 2 * th * dim * 2            # w2 tiles (bf16)
                   + 2 * t * dim * out_bytes)    # out tiles
        fixed = (t * dim * 4 if need_acc else 0) + t * 2 * th * 4   # acc + gate temp
        return per_buf + fixed

    for t in (2048, 1536, 1024, 768, 512, 256, 128, 64, 32, 16):
        if t > tm_max:
            continue
        t_eff = min(t, m_al)
        if usage(t_eff) <= budget:
            return t_eff
    return 16


# ----------------------------------------------------------------------------- forward
@functools.partial(jax.jit, static_argnames=("th", "tm"))
def feed_forward(x, w13, w2t, *, th, tm=None):
    """x: [M, dim]; w13: [n_h, dim, 2*th]; w2t: [n_h, th, dim] (from prepare_ffn_params)."""
    M, dim = x.shape
    n_h = w13.shape[0]
    hidden = n_h * th

    budget, n_tc = _tpu_budget_and_cores()
    out_dtype = x.dtype
    need_acc = out_dtype != jnp.float32
    tm_max = tm if tm is not None else 2048

    tm_eff = _choose_tm(M, dim, th, x.dtype.itemsize,
                        jnp.dtype(out_dtype).itemsize, need_acc, budget, tm_max)

    # v7x (2 TCs): make sure the "parallel" batch axis has >= n_tc row tiles.
    if n_tc > 1 and _round_up(M, tm_eff) // tm_eff < n_tc:
        per_core = _round_up(max(1, -(-M // n_tc)), 16)
        tm_eff = max(16, min(tm_eff, per_core))

    m_pad = _round_up(M, tm_eff)
    x_in = x if m_pad == M else jnp.pad(x, ((0, m_pad - M), (0, 0)))
    grid = (m_pad // tm_eff, n_h)

    scratch = [pltpu.VMEM((tm_eff, dim), jnp.float32)] if need_acc else []

    weight_bytes = (w13.size + w2t.size) * 2
    cost = pl.CostEstimate(
        flops=6 * m_pad * dim * hidden,
        transcendentals=m_pad * hidden,
        bytes_accessed=(m_pad * dim * x.dtype.itemsize
                        + weight_bytes * grid[0]                 # weights re-stream per row tile
                        + m_pad * dim * jnp.dtype(out_dtype).itemsize),
    )

    out = pl.pallas_call(
        _ffn_kernel,
        out_shape=jax.ShapeDtypeStruct((m_pad, dim), out_dtype),
        grid_spec=pltpu.PrefetchScalarGridSpec(
            num_scalar_prefetch=0,
            grid=grid,
            in_specs=[
                pl.BlockSpec((tm_eff, dim), lambda i, j: (i, 0)),        # x rows (resident over j)
                pl.BlockSpec((None, dim, 2 * th), lambda i, j: (j, 0, 0)),  # fused w1|w3 tile
                pl.BlockSpec((None, th, dim), lambda i, j: (j, 0, 0)),      # w2 row tile
            ],
            out_specs=pl.BlockSpec((tm_eff, dim), lambda i, j: (i, 0)),
            scratch_shapes=scratch,
        ),
        compiler_params=pltpu.CompilerParams(
            dimension_semantics=("parallel", "arbitrary"),
            vmem_limit_bytes=int(budget),
        ),
        cost_estimate=cost,
    )(x_in, w13, w2t)

    return out[:M] if m_pad != M else out


# ----------------------------------------------------------------------------- self-test
if __name__ == "__main__":
    def module_hidden(hidden_dim, multiple_of):
        hidden_dim = int(2 * hidden_dim / 3)
        return multiple_of * ((hidden_dim + multiple_of - 1) // multiple_of)

    def reference(x, w1, w2, w3):
        # Mirrors kernel precision: bf16 matmul inputs, f32 accumulation, f32 gate.
        xb = x.astype(jnp.bfloat16)
        h1 = jnp.dot(xb, w1.T.astype(jnp.bfloat16), preferred_element_type=jnp.float32)
        h3 = jnp.dot(xb, w3.T.astype(jnp.bfloat16), preferred_element_type=jnp.float32)
        g = (h1 * jax.nn.sigmoid(h1)) * h3
        o = jnp.dot(g.astype(jnp.bfloat16), w2.T.astype(jnp.bfloat16),
                    preferred_element_type=jnp.float32)
        return o.astype(x.dtype)

    key = jax.random.PRNGKey(0)

    # Case 0: small config, single hidden tile, f32 I/O.
    # Case 1: batch not multiple of 16 (row padding) + 2 hidden tiles
    #         (accumulate-into-output path).
    # Case 2: bf16 activations (f32 scratch-accumulator path).
    cases = [
        (16, 128, 192, 128, 512, jnp.float32, 2e-3),
        (20, 256, 384, 128, 128, jnp.float32, 2e-3),
        (24, 256, 384, 128, 128, jnp.bfloat16, 2e-2),
    ]
    for case, (batch, dim, hcfg, mult, th_req, xdt, tol) in enumerate(cases):
        hidden = module_hidden(hcfg, mult)
        key, kx, k1, k2, k3 = jax.random.split(key, 5)
        x = jax.random.normal(kx, (batch, dim), dtype=jnp.float32).astype(xdt)
        # PyTorch nn.Linear weight shapes: w1, w3: [hidden, dim]; w2: [dim, hidden]
        w1 = jax.random.normal(k1, (hidden, dim), dtype=jnp.float32) * 0.02
        w2 = jax.random.normal(k2, (dim, hidden), dtype=jnp.float32) * 0.02
        w3 = jax.random.normal(k3, (hidden, dim), dtype=jnp.float32) * 0.02

        w13, w2t, th = prepare_ffn_params(w1, w2, w3, th=th_req)
        out = feed_forward(x, w13, w2t, th=th)
        out = jax.block_until_ready(out)

        ref = reference(x, w1, w2, w3)
        max_diff = float(jnp.max(jnp.abs(out.astype(jnp.float32)
                                         - ref.astype(jnp.float32))))
        assert jnp.allclose(out.astype(jnp.float32), ref.astype(jnp.float32),
                            atol=tol, rtol=tol), (
            f"case {case}: mismatch vs reference (max abs diff {max_diff})")

    print("KERNEL_OK")
</pallas_src>

<mosaic_0001>
module attributes {stable_mosaic.version = 11 : i64} {
  func.func @_ffn_kernel(%arg0: i32, %arg1: i32, %arg2: memref<16x128xf32, #tpu.memory_space<vmem>>, %arg3: memref<1x128x256xbf16, #tpu.memory_space<vmem>>, %arg4: memref<1x128x128xbf16, #tpu.memory_space<vmem>>, %arg5: memref<16x128xf32, #tpu.memory_space<vmem>>) attributes {dimension_semantics = [#tpu.dimension_semantics<parallel>, #tpu.dimension_semantics<arbitrary>], iteration_bounds = array<i64: 1, 1>, scalar_prefetch = 0 : i64, scratch_operands = 0 : i64, tpu.core_type = #tpu.core_type<tc>, window_params = [{transform_indices = @transform_0, window_bounds = array<i64: 16, 128>}, {transform_indices = @transform_1, window_bounds = array<i64: 1, 128, 256>}, {transform_indices = @transform_2, window_bounds = array<i64: 1, 128, 128>}, {transform_indices = @transform_3, window_bounds = array<i64: 16, 128>}]} {
    %c0 = arith.constant 0 : index
    %c0_0 = arith.constant 0 : index
    %0 = vector.load %arg2[%c0, %c0_0] : memref<16x128xf32, #tpu.memory_space<vmem>>, vector<16x128xf32>
    %1 = arith.truncf %0 : vector<16x128xf32> to vector<16x128xbf16>
    %c0_1 = arith.constant 0 : index
    %c0_2 = arith.constant 0 : index
    %c0_3 = arith.constant 0 : index
    %2 = vector.load %arg3[%c0_1, %c0_2, %c0_3] : memref<1x128x256xbf16, #tpu.memory_space<vmem>>, vector<1x128x256xbf16>
    %3 = vector.shape_cast %2 : vector<1x128x256xbf16> to vector<128x256xbf16>
    %cst = arith.constant dense<0.000000e+00> : vector<16x256xf32>
    %4 = tpu.matmul %1, %3, %cst {dimension_numbers = #tpu.dot_dimension_numbers<[1], [0], [0], [1], [0, 0, 1, 1], [], []>} : vector<16x128xbf16>, vector<128x256xbf16>, vector<16x256xf32> -> vector<16x256xf32>
    %5 = vector.extract_strided_slice %4 {offsets = [0, 0], sizes = [16, 128], strides = [1, 1]} : vector<16x256xf32> to vector<16x128xf32>
    %6 = vector.extract_strided_slice %4 {offsets = [0, 128], sizes = [16, 128], strides = [1, 1]} : vector<16x256xf32> to vector<16x128xf32>
    %7 = arith.negf %5 : vector<16x128xf32>
    %8 = math.exp %7 : vector<16x128xf32>
    %cst_4 = arith.constant 1.000000e+00 : f32
    %9 = vector.broadcast %cst_4 : f32 to vector<16x128xf32>
    %10 = arith.addf %9, %8 : vector<16x128xf32>
    %11 = arith.divf %9, %10 : vector<16x128xf32>
    %12 = arith.mulf %5, %11 : vector<16x128xf32>
    %13 = arith.mulf %12, %6 : vector<16x128xf32>
    %14 = arith.truncf %13 : vector<16x128xf32> to vector<16x128xbf16>
    %c0_5 = arith.constant 0 : index
    %c0_6 = arith.constant 0 : index
    %c0_7 = arith.constant 0 : index
    %15 = vector.load %arg4[%c0_5, %c0_6, %c0_7] : memref<1x128x128xbf16, #tpu.memory_space<vmem>>, vector<1x128x128xbf16>
    %16 = vector.shape_cast %15 : vector<1x128x128xbf16> to vector<128x128xbf16>
    %cst_8 = arith.constant dense<0.000000e+00> : vector<16x128xf32>
    %17 = tpu.matmul %14, %16, %cst_8 {dimension_numbers = #tpu.dot_dimension_numbers<[1], [0], [0], [1], [0, 0, 1, 1], [], []>} : vector<16x128xbf16>, vector<128x128xbf16>, vector<16x128xf32> -> vector<16x128xf32>
    %c0_i32 = arith.constant 0 : i32
    %18 = arith.cmpi eq, %arg1, %c0_i32 : i32
    %19 = arith.extui %18 : i1 to i32
    %c0_i32_9 = arith.constant 0 : i32
    %20 = arith.cmpi ne, %19, %c0_i32_9 : i32
    scf.if %20 {
      %c0_12 = arith.constant 0 : index
      %c0_13 = arith.constant 0 : index
      %24 = vector.load %arg5[%c0_12, %c0_13] : memref<16x128xf32, #tpu.memory_space<vmem>>, vector<16x128xf32>
      tpu.vector_store %arg5[%c0_12, %c0_13], %17 {strides = array<i32>} : memref<16x128xf32, #tpu.memory_space<vmem>>, vector<16x128xf32>,
    } else {
    }
    %c0_i32_10 = arith.constant 0 : i32
    %21 = arith.cmpi sgt, %arg1, %c0_i32_10 : i32
    %22 = arith.extui %21 : i1 to i32
    %c0_i32_11 = arith.constant 0 : i32
    %23 = arith.cmpi ne, %22, %c0_i32_11 : i32
    scf.if %23 {
      %c0_12 = arith.constant 0 : index
      %c0_13 = arith.constant 0 : index
      %24 = vector.load %arg5[%c0_12, %c0_13] : memref<16x128xf32, #tpu.memory_space<vmem>>, vector<16x128xf32>
      %25 = arith.addf %24, %17 : vector<16x128xf32>
      %c0_14 = arith.constant 0 : index
      %c0_15 = arith.constant 0 : index
      %26 = vector.load %arg5[%c0_14, %c0_15] : memref<16x128xf32, #tpu.memory_space<vmem>>, vector<16x128xf32>
      tpu.vector_store %arg5[%c0_14, %c0_15], %25 {strides = array<i32>} : memref<16x128xf32, #tpu.memory_space<vmem>>, vector<16x128xf32>,
    } else {
    }
    return
  }
  func.func @transform_0(%arg0: i32, %arg1: i32) -> (i32, i32) {
    %c0_i32 = arith.constant 0 : i32
    %c0_i32_0 = arith.constant 0 : i32
    return %arg0, %c0_i32 : i32, i32
  }
  func.func @transform_1(%arg0: i32, %arg1: i32) -> (i32, i32, i32) {
    %c0_i32 = arith.constant 0 : i32
    %c0_i32_0 = arith.constant 0 : i32
    %c0_i32_1 = arith.constant 0 : i32
    return %arg1, %c0_i32, %c0_i32_0 : i32, i32, i32
  }
  func.func @transform_2(%arg0: i32, %arg1: i32) -> (i32, i32, i32) {
    %c0_i32 = arith.constant 0 : i32
    %c0_i32_0 = arith.constant 0 : i32
    %c0_i32_1 = arith.constant 0 : i32
    return %arg1, %c0_i32, %c0_i32_0 : i32, i32, i32
  }
  func.func @transform_3(%arg0: i32, %arg1: i32) -> (i32, i32) {
    %c0_i32 = arith.constant 0 : i32
    %c0_i32_0 = arith.constant 0 : i32
    return %arg0, %c0_i32 : i32, i32
  }
}

</mosaic_0001>

<bundles_post_ra>
// kernel: feed_forward.1
= control target key start
LH: loop header
LB: loop body
LE: loop exit
PB: predicated region body
PF: predicated region fallthrough
CT: control target
= control target key end

     0   :  { %8 = vsyncpa [#allocation3], 0  ;;  %s650_s0 = inlined_call_operand.hbm [shape: f32[16,128], index: 0, kind: input, shape index: {}]   ;;  %s651_s1 = inlined_call_operand.hbm [shape: bf16[1,128,256], index: 1, kind: input, shape index: {}]   ;;  %s652_s2 = inlined_call_operand.hbm [shape: bf16[1,128,128], index: 2, kind: input, shape index: {}]   ;;  %s653_s3 = inlined_call_operand.hbm [shape: f32[16,128], index: 3, kind: output, shape index: {}]  }
   0x1   :  { %9 = vsyncpa [#allocation6], 0 }
   0x2   :  { %10 = vsyncpa [#allocation4], 0  ;;  %s555_s12 = smov [#allocation5]   ;;  %s556_s14 = smov [#allocation2]  }
   0x3   :  { %s28_s13 = sshll.u32 %s555_s12, 4  ;;  %s16_s15 = sshll.u32 %s556_s14, 4  ;;  %s29_s13 = int_to_ptr.vmem [resolvable:$true] %s28_s13  ;;  %s586_s15 = int_to_ptr.vmem [resolvable:$true] %s16_s15 }
   0x4   :  { %s461_s18 = scalar_lea.hbm %s651_s1, 2048 }
   0x5   :  { %p462_p0 = scmp.ne.s32.totalorder %s651_s1, %s461_s18  ;;  %p465_p1 = scmp.lt.u32.totalorder %s461_s18, %s651_s1 }
   0x7   :  { %p467_p2 = pnand %p465_p1, %p462_p0 }
   0x9   :  { %470 = shalt.err (!%p467_p2)
}
   0xa   :  { %s471_s23 = scalar_lea.vmem %s29_s13, 2048  ;;  %p476_p4 = scmp.lt.s32.totalorder %s29_s13, %s29_s13 }
   0xb   :  { %p472_p3 = scmp.ne.s32.totalorder %s29_s13, %s471_s23  ;;  %p477_p5 = scmp.lt.s32.totalorder %s471_s23, %s471_s23 }
   0xd   :  { %p478_p6 = por %p477_p5, %p476_p4 }
   0xf   :  { %p479_p7 = pnand %p478_p6, %p472_p3 }
  0x11   :  { %482 = shalt.err (!%p479_p7)
}
  0x12   :  { %s557_s24 = smov 128   ;;  %s558_s25 = smov 8  }
  0x13   :  { %34 = dma.hbm_to_vmem [thread:$0]  %s651_s1, 2048, %s29_s13, [#allocation6], %s557_s24, %s557_s24, %s558_s25  }
  0x14   :  { %s483_s30 = scalar_lea.hbm %s650_s0, 256 }
  0x15   :  { %p484_p8 = scmp.ne.s32.totalorder %s650_s0, %s483_s30  ;;  %p487_p9 = scmp.lt.u32.totalorder %s483_s30, %s650_s0 }
  0x17   :  { %p489_p10 = pnand %p487_p9, %p484_p8 }
  0x19   :  { %492 = shalt.err (!%p489_p10)
}
  0x1a   :  { %s493_s8 = scalar_lea.vmem %s586_s15, 256  ;;  %p498_p12 = scmp.lt.s32.totalorder %s586_s15, %s586_s15 }
  0x1b   :  { %p494_p11 = scmp.ne.s32.totalorder %s586_s15, %s493_s8  ;;  %p499_p13 = scmp.lt.s32.totalorder %s493_s8, %s493_s8 }
  0x1d   :  { %p500_p0 = por %p499_p13, %p498_p12 }
  0x1f   :  { %p501_p1 = pnand %p500_p0, %p494_p11 }
  0x21   :  { %504 = shalt.err (!%p501_p1)
}
  0x22   :  { %22 = dma.hbm_to_vmem [thread:$0]  %s650_s0, 256, %s586_s15, [#allocation3], %s557_s24, %s557_s24, %s558_s25  }
  0x23   :  { %s559_s10 = smov [#allocation7]   ;;  %s505_s14 = scalar_lea.hbm %s652_s2, 1024 }
  0x24   :  { %s40_s11 = sshll.u32 %s559_s10, 4  ;;  %p506_p2 = scmp.ne.s32.totalorder %s652_s2, %s505_s14  ;;  %s41_s11 = int_to_ptr.vmem [resolvable:$true] %s40_s11 }
  0x25   :  { %p509_p3 = scmp.lt.u32.totalorder %s505_s14, %s652_s2 }
  0x27   :  { %p511_p4 = pnand %p509_p3, %p506_p2 }
  0x29   :  { %514 = shalt.err (!%p511_p4)
}
  0x2a   :  { %s515_s20 = scalar_lea.vmem %s41_s11, 1024  ;;  %p520_p6 = scmp.lt.s32.totalorder %s41_s11, %s41_s11 }
  0x2b   :  { %p516_p5 = scmp.ne.s32.totalorder %s41_s11, %s515_s20  ;;  %p521_p7 = scmp.lt.s32.totalorder %s515_s20, %s515_s20 }
  0x2d   :  { %p522_p8 = por %p521_p7, %p520_p6 }
  0x2f   :  { %p523_p9 = pnand %p522_p8, %p516_p5 }
  0x31   :  { %526 = shalt.err (!%p523_p9)
}
  0x32   :  { %s560_s0 = smov 64   ;;  %s561_s15 = smov 4  }
  0x33   :  { %46 = dma.hbm_to_vmem [thread:$0]  %s652_s2, 1024, %s41_s11, [#allocation6], %s560_s0, %s560_s0, %s561_s15  }
  0x34   :  { %549 = dma.done.wait [#allocation3], 256  }
  0x35   :  { %550 = vsyncadd [#allocation3], 4294967040 }
  0x36   :  { %551 = dma.done.wait [#allocation6], 3072  }
  0x37   :  { %552 = vsyncadd [#allocation6], 4294964224  ;;  %v562_v0 = vmov 0   ;;  %v421_v1 = vld [vmem:[#allocation5 + $0x4] ss:$8 sps:$4 sm:$0xff]   ;;  %v57_v17 = vld [vmem:[#allocation2] sm:$0xff] }
  0x38   :  { %188 = vmatprep.mubr.bf16.mxu0 %v562_v0  ;;  %v423_v2 = vld [vmem:[#allocation5] ss:$8 sps:$4 sm:$0xff]   ;;  %156 = vmatprep.subr.bf16.mxu0 %v421_v1  ;;  %v424_v3 = vld [vmem:[#allocation5 + $0x14] ss:$8 sps:$4 sm:$0xff]   ;;  %v426_v4 = vld [vmem:[#allocation5 + $0x10] ss:$8 sps:$4 sm:$0xff]  }
  0x39   :  { %157 = vmatpush1.bf16.msra.mxu0 %v423_v2  ;;  %v427_v5 = vld [vmem:[#allocation5 + $0x24] ss:$8 sps:$4 sm:$0xff]   ;;  %v429_v6 = vld [vmem:[#allocation5 + $0x20] ss:$8 sps:$4 sm:$0xff]   ;;  %v430_v7 = vld [vmem:[#allocation5 + $0x34] ss:$8 sps:$4 sm:$0xff]  }
  0x3a   :  { %158 = vmatprep.subr.bf16.mxu0 %v424_v3  ;;  %v432_v8 = vld [vmem:[#allocation5 + $0x30] ss:$8 sps:$4 sm:$0xff]   ;;  %v433_v9 = vld [vmem:[#allocation5 + $0x44] ss:$8 sps:$4 sm:$0xff]   ;;  %v435_v10 = vld [vmem:[#allocation5 + $0x40] ss:$8 sps:$4 sm:$0xff]  }
  0x3b   :  { %v436_v11 = vld [vmem:[#allocation5 + $0x54] ss:$8 sps:$4 sm:$0xff]   ;;  %v438_v12 = vld [vmem:[#allocation5 + $0x50] ss:$8 sps:$4 sm:$0xff]   ;;  %v439_v13 = vld [vmem:[#allocation5 + $0x64] ss:$8 sps:$4 sm:$0xff]  }
  0x3c   :  { %v441_v14 = vld [vmem:[#allocation5 + $0x60] ss:$8 sps:$4 sm:$0xff]   ;;  %v442_v15 = vld [vmem:[#allocation5 + $0x74] ss:$8 sps:$4 sm:$0xff]   ;;  %v444_v16 = vld [vmem:[#allocation5 + $0x70] ss:$8 sps:$4 sm:$0xff]  }
  0x3d   :  { %159 = vmatpush1.bf16.msra.mxu0 %v426_v4  ;;  %v58_v18 = vld [vmem:[#allocation2 + $0x8] sm:$0xff]  ;;  %v445_v20 = vld [vmem:[#allocation7] sm:$0xff]   ;;  %v563_v21 = vmov 0.0   ;;  %v446_v22 = vld [vmem:[#allocation7 + $0x8] sm:$0xff]   ;;  %vm564_vm0 = vmmov 0   ;;  %s565_s2 = smov [#allocation8]  }
  0x3e   :  { %160 = vmatprep.subr.bf16.mxu0 %v427_v5  ;;  %v59_v19 = vpack.c.bf16 %v58_v18, %v57_v17  ;;  %390 = vmatprep.subr.bf16.mxu1 %v563_v21  ;;  %v447_v23 = vld [vmem:[#allocation7 + $0x10] sm:$0xff]   ;;  %v448_v24 = vld [vmem:[#allocation7 + $0x18] sm:$0xff]   ;;  %v449_v25 = vld [vmem:[#allocation7 + $0x20] sm:$0xff]   ;;  %s342_s23 = sshll.u32 %s565_s2, 4  ;;  %s343_s23 = int_to_ptr.vmem [resolvable:$true] %s342_s23 }
  0x3f   :  { %391 = vmatpush3.bf16.msra.mxu1 %v445_v20  ;;  %v450_v26 = vld [vmem:[#allocation7 + $0x28] sm:$0xff]   ;;  %v451_v27 = vld [vmem:[#allocation7 + $0x30] sm:$0xff]   ;;  %v452_v28 = vld [vmem:[#allocation7 + $0x38] sm:$0xff]   ;;  %406 = vmatprep.mubr.msk.bf16.mxu1 %vm564_vm0, %v563_v21  ;;  %s527_s26 = scalar_lea.vmem %s343_s23, 256  ;;  %p532_p11 = scmp.lt.s32.totalorder %s343_s23, %s343_s23 }
  0x40   :  { %392 = vmatprep.subr.bf16.mxu1 %v563_v21  ;;  %p528_p10 = scmp.ne.s32.totalorder %s343_s23, %s527_s26  ;;  %p533_p12 = scmp.lt.s32.totalorder %s527_s26, %s527_s26 }
  0x41   :  { %161 = vmatpush1.bf16.msra.mxu0 %v429_v6 }
  0x42   :  { %162 = vmatprep.subr.bf16.mxu0 %v430_v7  ;;  %p534_p13 = por %p533_p12, %p532_p11 }
  0x43   :  { %393 = vmatpush3.bf16.msra.mxu1 %v446_v22 }
  0x44   :  { %394 = vmatprep.subr.bf16.mxu1 %v563_v21  ;;  %p535_p0 = pnand %p534_p13, %p528_p10 }
  0x45   :  { %163 = vmatpush1.bf16.msra.mxu0 %v432_v8 }
  0x46   :  { %164 = vmatprep.subr.bf16.mxu0 %v433_v9 }
  0x47   :  { %395 = vmatpush3.bf16.msra.mxu1 %v447_v23 }
  0x48   :  { %396 = vmatprep.subr.bf16.mxu1 %v563_v21 }
  0x49   :  { %165 = vmatpush1.bf16.msra.mxu0 %v435_v10 }
  0x4a   :  { %166 = vmatprep.subr.bf16.mxu0 %v436_v11 }
  0x4b   :  { %397 = vmatpush3.bf16.msra.mxu1 %v448_v24 }
  0x4c   :  { %398 = vmatprep.subr.bf16.mxu1 %v563_v21 }
  0x4d   :  { %167 = vmatpush1.bf16.msra.mxu0 %v438_v12 }
  0x4e   :  { %168 = vmatprep.subr.bf16.mxu0 %v439_v13 }
  0x4f   :  { %399 = vmatpush3.bf16.msra.mxu1 %v449_v25 }
  0x50   :  { %400 = vmatprep.subr.bf16.mxu1 %v563_v21 }
  0x51   :  { %169 = vmatpush1.bf16.msra.mxu0 %v441_v14 }
  0x52   :  { %170 = vmatprep.subr.bf16.mxu0 %v442_v15 }
  0x53   :  { %401 = vmatpush3.bf16.msra.mxu1 %v450_v26 }
  0x54   :  { %402 = vmatprep.subr.bf16.mxu1 %v563_v21 }
  0x55   :  { %171 = vmatpush1.bf16.msra.mxu0 %v444_v16 }
  0x57   :  { %403 = vmatpush3.bf16.msra.mxu1 %v451_v27 }
  0x58   :  { %189 = vmatmul.mubr.bf16.vlgmr.msra.gmra.mrb[0].mxu0 %v59_v19  ;;  %404 = vmatprep.subr.bf16.mxu1 %v563_v21 }
  0x5b   :  { %405 = vmatpush3.bf16.msra.mxu1 %v452_v28 }
 0x12b   :  { %v190_v29 = vpop.f32.mrb[0].mxu0 }
 0x12c   :  { %v371_v30 = vmul.f32 -1.442695, %v190_v29  ;;  %v192_v31 = vpop.f32.mrb[1].mxu0 }
 0x12d   :  { %v194_v32 = vpop.f32.mrb[2].mxu0 }
 0x12e   :  { %453 = vpow2.f32 %v371_v30  ;;  %v372_v33 = vmul.f32 -1.442695, %v194_v32  ;;  %v196_v34 = vpop.f32.mrb[3].mxu0 }
 0x130   :  { %455 = vpow2.f32 %v372_v33 }
 0x138   :  { %v454_v35 = vpop.eup %453 }
 0x139   :  { %v205_v36 = vadd.f32 1.0, %v454_v35 }
 0x13a   :  { %v456_v37 = vpop.eup %455 }
 0x13b   :  { %457 = vrcp.f32 %v205_v36  ;;  %v206_v38 = vadd.f32 1.0, %v456_v37 }
 0x13d   :  { %459 = vrcp.f32 %v206_v38 }
 0x145   :  { %v458_v39 = vpop.eup %457 }
 0x146   :  { %v211_v40 = vmul.f32 %v458_v39, %v190_v29 }
 0x147   :  { %v460_v41 = vpop.eup %459 }
 0x148   :  { %v213_v42 = vmul.f32 %v211_v40, %v192_v31  ;;  %v212_v43 = vmul.f32 %v460_v41, %v194_v32 }
 0x14a   :  { %v214_v44 = vmul.f32 %v212_v43, %v196_v34 }
 0x14c   :  { %v215_v45 = vpack.c.bf16 %v214_v44, %v213_v42 }
 0x14e   :  { %407 = vmatmul.mubr.bf16.vlgmr.msra.gmra.mrb[0].mxu1 %v215_v45 }
 0x221   :  { %v314_v46 = vpop.f32.mrb[0].mxu1 }
 0x222   :  { %325 = vst [vmem:[#allocation8] sm:$0xff] %v314_v46  ;;  %v408_v47 = vpop.f32.mrb[1].mxu1 }
 0x223   :  { %v317_v48 = vpop.f32.mrb[2].mxu1 }
 0x224   :  { %326 = vst [vmem:[#allocation8 + $0x8] sm:$0xff] %v317_v48  ;;  %v409_v49 = vpop.f32.mrb[3].mxu1 }
 0x225   :  { %538 = shalt.err (!%p535_p0)
}
 0x226   :  { %s539_s29 = scalar_lea.hbm %s653_s3, 256 }
 0x227   :  { %p540_p1 = scmp.ne.s32.totalorder %s653_s3, %s539_s29  ;;  %p543_p2 = scmp.lt.u32.totalorder %s539_s29, %s653_s3 }
 0x229   :  { %p545_p3 = pnand %p543_p2, %p540_p1 }
 0x22b   :  { %548 = shalt.err (!%p545_p3)
}
 0x22c   :  { %348 = dma.vmem_to_hbm [thread:$0]  %s343_s23, 256, %s653_s3, [#allocation4], %s557_s24, %s557_s24, %s558_s25  }
 0x22d   :  { %553 = dma.done.wait [#allocation4], 256  }
 0x22e   :  { %554 = vsyncadd [#allocation4], 4294967040 }
 0x22f   :  { %352 = vsyncpa [#allocation3], 1 }
 0x230   :  { %353 = vsyncpa [#allocation6], 1 }
 0x231   :  { %354 = vsyncpa [#allocation4], 1 }

</bundles_post_ra>
